<compile_context>
chip_gen: v7x
topology: tpu7x:2x2x1
jax: 0.10.0
libtpu: 0.0.40
codegen_flags: <defaults>
</compile_context>

<pallas_src>
import jax
import jax.numpy as jnp
from jax import lax
from jax.experimental import pallas as pl
from jax.experimental.pallas import tpu as pltpu


def _pow2_floor(n: int) -> int:
    return 1 << (max(int(n), 1).bit_length() - 1)


def _vmem_budget():
    """(per input-buffer bytes, scoped-VMEM limit) safe on v5e / v6e / v7x."""
    try:
        info = pltpu.get_tpu_info()
        phys = int(getattr(info, "vmem_capacity_bytes", 64 << 20))
    except Exception:  # not on TPU hardware / interpret mode
        phys = 64 << 20
    limit = min(48 << 20, (phys * 3) // 4)        # explicitly above the scoped defaults
    per_buffer = min(16 << 20, max(2 << 20, (limit - (2 << 20)) // 2))
    return per_buffer, limit


def _choose_tiling(rows, hw, itemsize, per_buffer_bytes):
    """Lane tile t (multiple of strip), strip width, grid sizes."""
    hw_128 = ((hw + 127) // 128) * 128
    rows_tiles = -(-rows // 8)
    # Strip = in-kernel reduction chunk: power-of-two multiple of 128, sized so
    # the live vreg set stays well under 64, and never wider than the row.
    if rows_tiles <= 2:
        strip = 1024
    elif rows_tiles <= 4:
        strip = 512
    else:
        strip = 256
    strip = min(strip, 128 * _pow2_floor(hw_128 // 128))

    lanes_budget = per_buffer_bytes // max(rows * itemsize, 1)
    t = max(strip, (lanes_budget // strip) * strip)
    t = min(t, -(-hw // strip) * strip)           # never wider than ceil(hw/strip)*strip
    n_blocks = -(-hw // t)
    pdim = 2 if n_blocks >= 2 else 1              # feed both v7x TensorCores
    kb = -(-n_blocks // pdim)
    return t, strip, n_blocks, pdim, kb


def _make_row_sum_kernel(hw, t, strip, kb, rows, need_mask):
    n_strips = t // strip

    def kernel(x_ref, acc_ref):
        p = pl.program_id(0)
        k = pl.program_id(1)

        @pl.when(k == 0)
        def _():
            acc_ref[...] = jnp.zeros_like(acc_ref)

        g0 = (p * kb + k) * t                     # intended global column start
        if need_mask:
            lane_iota = lax.broadcasted_iota(jnp.int32, (1, strip), 1)

        def strip_body(s, acc):
            start = pl.multiple_of(s * strip, strip)
            v = x_ref[:, pl.ds(start, strip)].astype(jnp.float32)
            if need_mask:
                rem = hw - g0 - s * strip         # valid lanes in this strip
                v = jnp.where(lane_iota < rem, v, 0.0)
            # Pairwise-halve strip -> 128 lanes: lane-tile-aligned static
            # slices, pure VPU adds (no XLU), better-conditioned accumulation.
            w = strip
            while w > 128:
                h = w // 2
                v = v[:, :h] + v[:, h:]
                w = h
            return acc + v

        acc = lax.fori_loop(0, n_strips, strip_body,
                            jnp.zeros((rows, 128), jnp.float32),
                            unroll=min(4, n_strips))
        acc_ref[...] += acc

    return kernel


def _gw_loss_jax(B_inf):
    x = B_inf.astype(jnp.float32)
    mean_color = jnp.mean(x, axis=(2, 3))
    gray_level = jnp.mean(mean_color, axis=1, keepdims=True)
    return jnp.mean(jnp.abs(mean_color - gray_level))


def backscatter_loss(backscatter, B_inf, J, *, use_pallas=None):
    """Pallas implementation of BackscatterLoss.forward (returns gw_loss).

    `backscatter` and `J` are accepted for signature parity with the PyTorch
    module but do not influence the returned value.
    """
    del backscatter, J  # unused by the returned loss
    B, C, H, W = B_inf.shape
    rows = B * C
    hw = H * W
    itemsize = jnp.dtype(B_inf.dtype).itemsize

    # Tiny-input fast path: pallas_call launch + pipeline ramp dwarfs the HBM traffic.
    if use_pallas is None:
        use_pallas = rows * hw * itemsize >= (512 * 1024)
    if not use_pallas:
        return _gw_loss_jax(B_inf)

    per_buffer_bytes, vmem_limit = _vmem_budget()
    t, strip, n_blocks, pdim, kb = _choose_tiling(rows, hw, itemsize, per_buffer_bytes)
    need_mask = (pdim * kb * t) != hw

    # Free, contiguous HBM reshape (no copy): channel folded into the sublane dim,
    # spatial axis on the fast lane axis.
    x = B_inf.reshape(rows, hw)

    kernel = _make_row_sum_kernel(hw, t, strip, kb, rows, need_mask)

    sums = pl.pallas_call(
        kernel,
        out_shape=jax.ShapeDtypeStruct((rows, pdim * 128), jnp.float32),
        grid_spec=pltpu.PrefetchScalarGridSpec(
            num_scalar_prefetch=0,
            grid=(pdim, kb),
            in_specs=[pl.BlockSpec(
                (rows, t),
                # Clamp: padded (p,k) slots re-read the last valid block and are
                # fully masked in-kernel, so no DMA ever runs out of bounds.
                lambda p, k: (0, jnp.minimum(p * kb + k, n_blocks - 1)))],
            # Output block fixed across k -> resident lane-dense accumulator,
            # written back to HBM once per parallel shard.
            out_specs=pl.BlockSpec((rows, 128), lambda p, k: (0, p)),
        ),
        compiler_params=pltpu.CompilerParams(
            dimension_semantics=("parallel", "arbitrary"),
            vmem_limit_bytes=vmem_limit,
        ),
    )(x)

    # Tiny epilogue on (rows, pdim*128) scalars — negligible vs the streamed read.
    row_sums = jnp.sum(sums, axis=1)                        # (rows,)
    mean_color = row_sums.reshape(B, C) / jnp.float32(hw)   # B_inf.mean(dim=(2,3))
    gray_level = jnp.mean(mean_color, axis=1, keepdims=True)
    return jnp.mean(jnp.abs(mean_color - gray_level))


if __name__ == "__main__":
    key = jax.random.PRNGKey(0)
    k1, k2, k3 = jax.random.split(key, 3)

    # Small shapes consistent with the module: NCHW, 3 channels (RGB).
    B, C, H, W = 2, 3, 16, 16
    backscatter = jax.random.uniform(k1, (B, C, H, W), dtype=jnp.float32)
    B_inf = jax.random.uniform(k2, (B, C, H, W), dtype=jnp.float32)
    J = jax.random.uniform(k3, (B, C, H, W), dtype=jnp.float32)

    # Force the Pallas path so the kernel is exercised even at this tiny shape.
    loss = backscatter_loss(backscatter, B_inf, J, use_pallas=True)
    loss = jax.block_until_ready(loss)

    # Cross-check against a pure-JAX reference of the same math.
    ref = _gw_loss_jax(B_inf)
    assert jnp.allclose(loss, ref, atol=1e-6, rtol=1e-5), (loss, ref)

    # Auto path (tiny-input fast path) must agree as well.
    loss_auto = jax.block_until_ready(backscatter_loss(backscatter, B_inf, J))
    assert jnp.allclose(loss_auto, ref, atol=1e-6, rtol=1e-5), (loss_auto, ref)

    print("KERNEL_OK")
</pallas_src>

<mosaic_0001>
module attributes {stable_mosaic.version = 11 : i64} {
  func.func @kernel(%arg0: i32, %arg1: i32, %arg2: memref<6x256xf32, #tpu.memory_space<vmem>>, %arg3: memref<6x128xf32, #tpu.memory_space<vmem>>) attributes {dimension_semantics = [#tpu.dimension_semantics<parallel>, #tpu.dimension_semantics<arbitrary>], iteration_bounds = array<i64: 1, 1>, scalar_prefetch = 0 : i64, scratch_operands = 0 : i64, tpu.core_type = #tpu.core_type<tc>, window_params = [{transform_indices = @transform_0, window_bounds = array<i64: 6, 256>}, {transform_indices = @transform_1, window_bounds = array<i64: 6, 128>}]} {
    %c0_i32 = arith.constant 0 : i32
    %0 = arith.cmpi eq, %arg1, %c0_i32 : i32
    %1 = arith.extui %0 : i1 to i32
    %c0_i32_0 = arith.constant 0 : i32
    %2 = arith.cmpi ne, %1, %c0_i32_0 : i32
    scf.if %2 {
      %cst_6 = arith.constant 0.000000e+00 : f32
      %15 = vector.broadcast %cst_6 : f32 to vector<6x128xf32>
      %c0_7 = arith.constant 0 : index
      %c0_8 = arith.constant 0 : index
      %16 = vector.load %arg3[%c0_7, %c0_8] : memref<6x128xf32, #tpu.memory_space<vmem>>, vector<6x128xf32>
      tpu.vector_store %arg3[%c0_7, %c0_8], %15 {strides = array<i32>} : memref<6x128xf32, #tpu.memory_space<vmem>>, vector<6x128xf32>,
    } else {
    }
    %cst = arith.constant 0.000000e+00 : f32
    %3 = vector.broadcast %cst : f32 to vector<6x128xf32>
    %c0_i32_1 = arith.constant 0 : i32
    %c256_i32 = arith.constant 256 : i32
    %4 = arith.muli %c0_i32_1, %c256_i32 : i32
    %5 = tpu.assume_multiple %4, 256 : i32
    %c0 = arith.constant 0 : index
    %6 = arith.index_cast %5 : i32 to index
    %7 = vector.load %arg2[%c0, %6] : memref<6x256xf32, #tpu.memory_space<vmem>>, vector<6x256xf32>
    %8 = vector.extract_strided_slice %7 {offsets = [0, 0], sizes = [6, 128], strides = [1, 1]} : vector<6x256xf32> to vector<6x128xf32>
    %9 = vector.extract_strided_slice %7 {offsets = [0, 128], sizes = [6, 128], strides = [1, 1]} : vector<6x256xf32> to vector<6x128xf32>
    %10 = arith.addf %8, %9 : vector<6x128xf32>
    %11 = arith.addf %3, %10 : vector<6x128xf32>
    %c1_i32 = arith.constant 1 : i32
    %c0_2 = arith.constant 0 : index
    %c0_3 = arith.constant 0 : index
    %12 = vector.load %arg3[%c0_2, %c0_3] : memref<6x128xf32, #tpu.memory_space<vmem>>, vector<6x128xf32>
    %13 = arith.addf %12, %11 : vector<6x128xf32>
    %c0_4 = arith.constant 0 : index
    %c0_5 = arith.constant 0 : index
    %14 = vector.load %arg3[%c0_4, %c0_5] : memref<6x128xf32, #tpu.memory_space<vmem>>, vector<6x128xf32>
    tpu.vector_store %arg3[%c0_4, %c0_5], %13 {strides = array<i32>} : memref<6x128xf32, #tpu.memory_space<vmem>>, vector<6x128xf32>,
    return
  }
  func.func @transform_0(%arg0: i32, %arg1: i32) -> (i32, i32) {
    %c1_i32 = arith.constant 1 : i32
    %0 = arith.muli %arg0, %c1_i32 : i32
    %1 = arith.addi %0, %arg1 : i32
    %c0_i32 = arith.constant 0 : i32
    %2 = arith.minsi %1, %c0_i32 : i32
    %c0_i32_0 = arith.constant 0 : i32
    %c0_i32_1 = arith.constant 0 : i32
    return %c0_i32_0, %2 : i32, i32
  }
  func.func @transform_1(%arg0: i32, %arg1: i32) -> (i32, i32) {
    %c0_i32 = arith.constant 0 : i32
    %c0_i32_0 = arith.constant 0 : i32
    return %c0_i32, %arg0 : i32, i32
  }
}

</mosaic_0001>

<bundles_post_ra>
// kernel: tpu_custom_call.1
= control target key start
LH: loop header
LB: loop body
LE: loop exit
PB: predicated region body
PF: predicated region fallthrough
CT: control target
= control target key end

     0   :  { %6 = vsyncpa [#allocation3], 0  ;;  %s148_s0 = inlined_call_operand.hbm [shape: f32[6,256], index: 0, kind: input, shape index: {}]   ;;  %s149_s1 = inlined_call_operand.hbm [shape: f32[6,128], index: 1, kind: output, shape index: {}]  }
   0x1   :  { %7 = vsyncpa [#allocation4], 0  ;;  %s111_s6 = smov [#allocation2]   ;;  %s63_s10 = scalar_lea.hbm %s148_s0, 256 }
   0x2   :  { %s20_s7 = sshll.u32 %s111_s6, 4  ;;  %p64_p0 = scmp.ne.s32.totalorder %s148_s0, %s63_s10  ;;  %s21_s7 = int_to_ptr.vmem [resolvable:$true] %s20_s7 }
   0x3   :  { %p67_p1 = scmp.lt.u32.totalorder %s63_s10, %s148_s0 }
   0x5   :  { %p69_p2 = pnand %p67_p1, %p64_p0 }
   0x7   :  { %72 = shalt.err (!%p69_p2)
}
   0x8   :  { %s73_s15 = scalar_lea.vmem %s21_s7, 256  ;;  %p78_p4 = scmp.lt.s32.totalorder %s21_s7, %s21_s7 }
   0x9   :  { %p74_p3 = scmp.ne.s32.totalorder %s21_s7, %s73_s15  ;;  %p79_p5 = scmp.lt.s32.totalorder %s73_s15, %s73_s15 }
   0xb   :  { %p80_p6 = por %p79_p5, %p78_p4 }
   0xd   :  { %p81_p7 = pnand %p80_p6, %p74_p3 }
   0xf   :  { %84 = shalt.err (!%p81_p7)
}
  0x10   :  { %23 = dma.hbm_to_vmem [thread:$0]  %s148_s0, 256, %s21_s7, [#allocation3]  }
  0x11   :  { %107 = dma.done.wait [#allocation3], 256  }
  0x12   :  { %108 = vsyncadd [#allocation3], 4294967040  ;;  %v112_v0 = vmov 0.0   ;;  %v36_v1 = vld [vmem:[#allocation2] sm:$0x3f]  ;;  %s113_s18 = smov [#allocation5]  }
  0x13   :  { %35 = vst [vmem:[#allocation5] sm:$0x3f] %v112_v0  ;;  %v37_v2 = vld [vmem:[#allocation2 + $0x8] sm:$0x3f]  ;;  %s49_s19 = sshll.u32 %s113_s18, 4  ;;  %s50_s19 = int_to_ptr.vmem [resolvable:$true] %s49_s19 }
  0x14   :  { %v38_v3 = vadd.f32 %v37_v2, %v36_v1  ;;  %s85_s20 = scalar_lea.vmem %s50_s19, 128  ;;  %p90_p9 = scmp.lt.s32.totalorder %s50_s19, %s50_s19 }
  0x15   :  { %p86_p8 = scmp.ne.s32.totalorder %s50_s19, %s85_s20  ;;  %p91_p10 = scmp.lt.s32.totalorder %s85_s20, %s85_s20 }
  0x17   :  { %p92_p11 = por %p91_p10, %p90_p9 }
  0x19   :  { %p93_p12 = pnand %p92_p11, %p86_p8 }
  0x1a   :  { %v40_v4 = vld [vmem:[#allocation5] sm:$0x3f] }
  0x1b   :  { %v41_v5 = vadd.f32 %v40_v4, %v38_v3 }
  0x1d   :  { %42 = vst [vmem:[#allocation5] sm:$0x3f] %v41_v5 }
  0x1e   :  { %96 = shalt.err (!%p93_p12)
}
  0x1f   :  { %s97_s22 = scalar_lea.hbm %s149_s1, 128 }
  0x20   :  { %p98_p13 = scmp.ne.s32.totalorder %s149_s1, %s97_s22  ;;  %p101_p0 = scmp.lt.u32.totalorder %s97_s22, %s149_s1 }
  0x22   :  { %p103_p1 = pnand %p101_p0, %p98_p13 }
  0x24   :  { %106 = shalt.err (!%p103_p1)
}
  0x25   :  { %52 = dma.vmem_to_hbm [thread:$0]  %s50_s19, 128, %s149_s1, [#allocation4]  }
  0x26   :  { %109 = dma.done.wait [#allocation4], 128  }
  0x27   :  { %110 = vsyncadd [#allocation4], 4294967168 }
  0x28   :  { %56 = vsyncpa [#allocation3], 1 }
  0x29   :  { %57 = vsyncpa [#allocation4], 1 }

</bundles_post_ra>
